<compile_context>
chip_gen: v7x
topology: tpu7x:2x2x1
jax: 0.10.0
libtpu: 0.0.40
codegen_flags: <defaults>
</compile_context>

<pallas_src>
import functools

import jax
import jax.numpy as jnp
from jax.experimental import pallas as pl
from jax.experimental.pallas import tpu as pltpu

K = 3          # conv kernel size (3x3, padding=1)
F_CH = 32      # conv output channels
D_EMB = 32     # embedding dim
LANE = 128     # TPU lane width


def _round_up(x, m):
    return ((x + m - 1) // m) * m


# ---------------------------------------------------------------------------
# Kernel: one grid step = block_b images, two MXU matmuls, no layout work.
# ---------------------------------------------------------------------------
def _embed_kernel(img_ref, wbig_ref, wfc_ref, bfc_ref, out_ref, *, block_b, h):
    """img_ref : (block_b*H, K*lane_img) bf16  dy-expanded image slab (+1.0 bias lane)
       wbig_ref: (K*lane_img, W*F)       bf16  banded conv weight (+ conv-bias row)
       wfc_ref : (W*F, LANE)             bf16  (w_fc / (H*W)) tiled over W, lane-padded
       bfc_ref : (1, LANE)               f32   fc bias, lane-padded
       out_ref : (block_b, LANE)         f32   lane/sublane-dense embedding tile
    """
    # 3x3 "same" conv + conv bias as ONE MXU matmul (contraction depth 3*128).
    acc = jnp.dot(img_ref[...], wbig_ref[...],
                  preferred_element_type=jnp.float32)            # (bh, W*F) f32
    relu = jnp.maximum(acc, 0.0)

    # Fused global-average-pool + Linear(F->D): the x-sum and 1/(H*W) scale are
    # folded into the W-tiled fc weight; only the tiny per-image H-sum remains.
    s = jnp.dot(relu.astype(jnp.bfloat16), wfc_ref[...],
                preferred_element_type=jnp.float32)              # (bh, LANE) f32
    emb = jnp.sum(s.reshape(block_b, h, s.shape[-1]), axis=1) + bfc_ref[...]
    out_ref[...] = emb.astype(out_ref.dtype)                     # (block_b, LANE)


# ---------------------------------------------------------------------------
# One-time weight preprocessing (hoisted out of the per-call path).
# ---------------------------------------------------------------------------
def prepare_embednet_params(w_conv, b_conv, w_fc, b_fc, *, c, h, w):
    hp2, wp2 = h + 2, w + 2
    wf = w * F_CH
    lane_img = _round_up(wp2 * c + 1, LANE)      # lane-dense image width (>= 72+1)
    bias_lane = wp2 * c                          # constant-1.0 lane index

    # Banded conv weight: wbig[dy*lane_img + (x+dx)*C + cc, x*F + f] = w[dy,dx,cc,f]
    w4 = jnp.asarray(w_conv, jnp.float32).reshape(K, K, c, F_CH)
    wband = jnp.zeros((K, lane_img, wf), jnp.float32)
    for x in range(w):
        for dx in range(K):
            wband = wband.at[:, (x + dx) * c:(x + dx + 1) * c,
                             x * F_CH:(x + 1) * F_CH].set(w4[:, dx])
    # Conv bias folded into the matmul: the image carries a 1.0 at bias_lane in
    # every row; only band dy=0 carries the bias weights (added once per (y,x)).
    bconv_tiled = jnp.tile(jnp.asarray(b_conv, jnp.float32).reshape(1, F_CH), (1, w))
    wband = wband.at[0, bias_lane, :].set(bconv_tiled[0])
    wbig = wband.reshape(K * lane_img, wf).astype(jnp.bfloat16)

    # FC weight with 1/(H*W) folded in, tiled over W (performs the x-sum), lane-padded.
    wfc_big = jnp.tile(jnp.asarray(w_fc, jnp.float32) / float(h * w), (w, 1))
    wfc_big = jnp.pad(wfc_big, ((0, 0), (0, LANE - D_EMB))).astype(jnp.bfloat16)
    bfc_pad = jnp.pad(jnp.asarray(b_fc, jnp.float32).reshape(1, D_EMB),
                      ((0, 0), (0, LANE - D_EMB)))

    return {"wbig": wbig, "wfc": wfc_big, "bfc": bfc_pad,
            "c": c, "h": h, "w": w, "lane_img": lane_img}


# ---------------------------------------------------------------------------
# Jitted data-prep + pallas_call (one XLA graph per (shape, block_b)).
# ---------------------------------------------------------------------------
@functools.partial(jax.jit, static_argnames=("c", "h", "w", "lane_img", "block_b"))
def _forward_padded(data, wbig, wfc, bfc, *, c, h, w, lane_img, block_b):
    n_pad = data.shape[0]
    hp2, wp2 = h + 2, w + 2
    wf = w * F_CH
    bias_lane = wp2 * c

    # NCHW -> zero-padded NHWC with (W,C) flattened, lane-padded, 1.0 bias lane.
    x = jnp.transpose(data.astype(jnp.float32), (0, 2, 3, 1))
    x = jnp.pad(x, ((0, 0), (1, 1), (1, 1), (0, 0))).reshape(n_pad, hp2, wp2 * c)
    x = jnp.pad(x, ((0, 0), (0, 0), (0, lane_img - wp2 * c)))
    x = x.at[:, :, bias_lane].set(1.0)
    # dy-expansion (row-wise im2col over dy only, 3x): the kernel needs zero
    # in-kernel concat/reshape and a single matmul with K = 3*lane_img.
    x = jnp.concatenate([x[:, dy:dy + h, :] for dy in range(K)], axis=-1)
    x = x.reshape(n_pad * h, K * lane_img).astype(jnp.bfloat16)

    grid_len = n_pad // block_b
    bh = block_b * h
    flops = int(grid_len * 2 * bh * (K * lane_img * wf + wf * LANE))
    bytes_accessed = int(x.size * 2 + wbig.size * 2 + wfc.size * 2
                         + bfc.size * 4 + n_pad * LANE * 4)

    # Scoped-VMEM budget from actual tile sizes (v7x: 64 MiB physical).
    vmem_est = (2 * bh * K * lane_img * 2                       # image, double-buffered
                + 2 * (wbig.size * 2 + wfc.size * 2 + bfc.size * 4)
                + 2 * block_b * LANE * 4                        # output tile
                + 2 * bh * wf * 4 + bh * wf * 2                 # acc/relu f32 + relu bf16
                + bh * LANE * 4)                                # pooled intermediate
    vmem_limit = int(min(max(vmem_est * 5 // 4, 16 * 1024 * 1024), 48 * 1024 * 1024))

    kernel = functools.partial(_embed_kernel, block_b=block_b, h=h)

    out = pl.pallas_call(
        kernel,
        out_shape=jax.ShapeDtypeStruct((n_pad, LANE), jnp.float32),
        grid_spec=pltpu.PrefetchScalarGridSpec(
            num_scalar_prefetch=0,
            grid=(grid_len,),
            in_specs=[
                pl.BlockSpec((bh, K * lane_img), lambda n: (n, 0)),   # image slab
                pl.BlockSpec((K * lane_img, wf), lambda n: (0, 0)),   # banded conv W
                pl.BlockSpec((wf, LANE), lambda n: (0, 0)),           # fused pool+fc W
                pl.BlockSpec((1, LANE), lambda n: (0, 0)),            # fc bias
            ],
            out_specs=pl.BlockSpec((block_b, LANE), lambda n: (n, 0)),
        ),
        compiler_params=pltpu.CompilerParams(
            dimension_semantics=("parallel",),
            vmem_limit_bytes=vmem_limit),
        cost_estimate=pl.CostEstimate(flops=flops, transcendentals=0,
                                      bytes_accessed=bytes_accessed),
    )(x, wbig, wfc, bfc)
    return out


def embednet_forward(data, params, label=None, *, block_b=None):
    """EmbedNet.forward(data, label=None) -> (N, D_EMB) float32 embeddings."""
    if label is not None:
        # TODO(synk): label branch requires the dynamically-imported loss module.
        raise NotImplementedError("EmbedNet loss branch (label != None) not implemented")

    c, h, w = params["c"], params["h"], params["w"]
    data = jnp.asarray(data).reshape(-1, c, h, w)      # data.reshape(-1, C, H, W)
    n = data.shape[0]

    if block_b is None:
        # Multiple of 8, capped at 128; aim for >=2 grid steps when possible
        # so both v7x TensorCores get work on the "parallel" axis.
        block_b = max(8, min(128, 8 * pl.cdiv(pl.cdiv(n, 2), 8)))
    assert block_b % 8 == 0, "block_b must be a multiple of 8 (sublane-dense output)"

    n_pad = pl.cdiv(n, block_b) * block_b
    if n_pad != n:
        data = jnp.pad(data, ((0, n_pad - n), (0, 0), (0, 0), (0, 0)))

    out = _forward_padded(data, params["wbig"], params["wfc"], params["bfc"],
                          c=c, h=h, w=w, lane_img=params["lane_img"],
                          block_b=block_b)
    return out[:n, :D_EMB]


# ---------------------------------------------------------------------------
# Pure-JAX reference matching the kernel numerics (bf16 MXU inputs, f32 accum).
# ---------------------------------------------------------------------------
def _reference_forward(data_nchw, w_conv, b_conv, w_fc, b_fc):
    C, H, W = data_nchw.shape[-3], data_nchw.shape[-2], data_nchw.shape[-1]
    data = data_nchw.reshape(-1, C, H, W).astype(jnp.float32)
    x = jnp.transpose(data, (0, 2, 3, 1))
    xp = jnp.pad(x, ((0, 0), (1, 1), (1, 1), (0, 0)))
    cols = []
    for dy in range(K):
        for dx in range(K):
            cols.append(xp[:, dy:dy + H, dx:dx + W, :])
    patches = jnp.stack(cols, axis=3).reshape(-1, H * W, K * K * C)

    conv = jnp.einsum('npk,kf->npf',
                      patches.astype(jnp.bfloat16), w_conv.astype(jnp.bfloat16),
                      preferred_element_type=jnp.float32)
    # kernel folds b_conv through the bf16 MXU (constant-1 lane) — match that
    bconv = b_conv.astype(jnp.bfloat16).astype(jnp.float32).reshape(1, 1, F_CH)
    conv = jnp.maximum(conv + bconv, 0.0)

    wfc_scaled = (w_fc / float(H * W)).astype(jnp.bfloat16)
    emb = jnp.einsum('npf,fd->nd', conv.astype(jnp.bfloat16), wfc_scaled,
                     preferred_element_type=jnp.float32)
    return emb + b_fc.reshape(1, D_EMB)


if __name__ == "__main__":
    key = jax.random.PRNGKey(0)
    k_x, k_wc, k_bc, k_wf, k_bf = jax.random.split(key, 5)

    # Small shapes consistent with the module's reshape(-1, C, H, W)
    N, C, H, W = 2, 4, 16, 16
    x = jax.random.normal(k_x, (N, C, H, W), dtype=jnp.float32)

    # Deterministic synthetic parameters (no checkpoint load)
    w_conv = 0.05 * jax.random.normal(k_wc, (K * K * C, F_CH), dtype=jnp.float32)
    b_conv = 0.01 * jax.random.normal(k_bc, (1, F_CH), dtype=jnp.float32)
    w_fc = 0.05 * jax.random.normal(k_wf, (F_CH, D_EMB), dtype=jnp.float32)
    b_fc = 0.01 * jax.random.normal(k_bf, (1, D_EMB), dtype=jnp.float32)

    # Weight layout preprocessing is done ONCE per parameter set.
    params = prepare_embednet_params(w_conv, b_conv, w_fc, b_fc, c=C, h=H, w=W)

    out = embednet_forward(x, params)
    out = jax.block_until_ready(out)

    ref = _reference_forward(x, w_conv, b_conv, w_fc, b_fc)
    assert out.shape == (N, D_EMB)
    assert jnp.allclose(out, ref, atol=5e-4, rtol=5e-4), \
        float(jnp.max(jnp.abs(out - ref)))

    print("KERNEL_OK")
</pallas_src>

<mosaic_0001>
module attributes {stable_mosaic.version = 11 : i64} {
  func.func @_embed_kernel(%arg0: i32, %arg1: memref<128x384xbf16, #tpu.memory_space<vmem>>, %arg2: memref<384x512xbf16, #tpu.memory_space<vmem>>, %arg3: memref<512x128xbf16, #tpu.memory_space<vmem>>, %arg4: memref<1x128xf32, #tpu.memory_space<vmem>>, %arg5: memref<8x128xf32, #tpu.memory_space<vmem>>) attributes {dimension_semantics = [#tpu.dimension_semantics<parallel>], iteration_bounds = array<i64: 1>, scalar_prefetch = 0 : i64, scratch_operands = 0 : i64, tpu.core_type = #tpu.core_type<tc>, window_params = [{transform_indices = @transform_0, window_bounds = array<i64: 128, 384>}, {pipeline_mode = #tpu.pipeline_mode<synchronous>, transform_indices = @transform_1, window_bounds = array<i64: 384, 512>}, {pipeline_mode = #tpu.pipeline_mode<synchronous>, transform_indices = @transform_2, window_bounds = array<i64: 512, 128>}, {pipeline_mode = #tpu.pipeline_mode<synchronous>, transform_indices = @transform_3, window_bounds = array<i64: 1, 128>}, {transform_indices = @transform_4, window_bounds = array<i64: 8, 128>}]} {
    %c0 = arith.constant 0 : index
    %c0_0 = arith.constant 0 : index
    %0 = vector.load %arg1[%c0, %c0_0] : memref<128x384xbf16, #tpu.memory_space<vmem>>, vector<128x384xbf16>
    %c0_1 = arith.constant 0 : index
    %c0_2 = arith.constant 0 : index
    %1 = vector.load %arg2[%c0_1, %c0_2] : memref<384x512xbf16, #tpu.memory_space<vmem>>, vector<384x512xbf16>
    %cst = arith.constant dense<0.000000e+00> : vector<128x512xf32>
    %2 = tpu.matmul %0, %1, %cst {dimension_numbers = #tpu.dot_dimension_numbers<[1], [0], [0], [1], [0, 0, 1, 1], [], []>} : vector<128x384xbf16>, vector<384x512xbf16>, vector<128x512xf32> -> vector<128x512xf32>
    %cst_3 = arith.constant 0.000000e+00 : f32
    %3 = vector.broadcast %cst_3 : f32 to vector<128x512xf32>
    %4 = arith.maximumf %2, %3 : vector<128x512xf32>
    %5 = arith.truncf %4 : vector<128x512xf32> to vector<128x512xbf16>
    %c0_4 = arith.constant 0 : index
    %c0_5 = arith.constant 0 : index
    %6 = vector.load %arg3[%c0_4, %c0_5] : memref<512x128xbf16, #tpu.memory_space<vmem>>, vector<512x128xbf16>
    %cst_6 = arith.constant dense<0.000000e+00> : vector<128x128xf32>
    %7 = tpu.matmul %5, %6, %cst_6 {dimension_numbers = #tpu.dot_dimension_numbers<[1], [0], [0], [1], [0, 0, 1, 1], [], []>} : vector<128x512xbf16>, vector<512x128xbf16>, vector<128x128xf32> -> vector<128x128xf32>
    %8 = vector.shape_cast %7 : vector<128x128xf32> to vector<8x16x128xf32>
    %cst_7 = arith.constant dense<0.000000e+00> : vector<8x128xf32>
    %9 = vector.multi_reduction <add>, %8, %cst_7 [1] : vector<8x16x128xf32> to vector<8x128xf32>
    %c0_8 = arith.constant 0 : index
    %c0_9 = arith.constant 0 : index
    %10 = vector.load %arg4[%c0_8, %c0_9] : memref<1x128xf32, #tpu.memory_space<vmem>>, vector<1x128xf32>
    %11 = vector.broadcast %10 : vector<1x128xf32> to vector<8x128xf32>
    %12 = arith.addf %9, %11 : vector<8x128xf32>
    %c0_10 = arith.constant 0 : index
    %c0_11 = arith.constant 0 : index
    %13 = vector.load %arg5[%c0_10, %c0_11] : memref<8x128xf32, #tpu.memory_space<vmem>>, vector<8x128xf32>
    tpu.vector_store %arg5[%c0_10, %c0_11], %12 {strides = array<i32>} : memref<8x128xf32, #tpu.memory_space<vmem>>, vector<8x128xf32>,
    return
  }
  func.func @transform_0(%arg0: i32) -> (i32, i32) {
    %c0_i32 = arith.constant 0 : i32
    %c0_i32_0 = arith.constant 0 : i32
    return %arg0, %c0_i32 : i32, i32
  }
  func.func @transform_1(%arg0: i32) -> (i32, i32) {
    %c0_i32 = arith.constant 0 : i32
    %c0_i32_0 = arith.constant 0 : i32
    %c0_i32_1 = arith.constant 0 : i32
    return %c0_i32, %c0_i32_0 : i32, i32
  }
  func.func @transform_2(%arg0: i32) -> (i32, i32) {
    %c0_i32 = arith.constant 0 : i32
    %c0_i32_0 = arith.constant 0 : i32
    %c0_i32_1 = arith.constant 0 : i32
    return %c0_i32, %c0_i32_0 : i32, i32
  }
  func.func @transform_3(%arg0: i32) -> (i32, i32) {
    %c0_i32 = arith.constant 0 : i32
    %c0_i32_0 = arith.constant 0 : i32
    %c0_i32_1 = arith.constant 0 : i32
    return %c0_i32, %c0_i32_0 : i32, i32
  }
  func.func @transform_4(%arg0: i32) -> (i32, i32) {
    %c0_i32 = arith.constant 0 : i32
    %c0_i32_0 = arith.constant 0 : i32
    return %arg0, %c0_i32 : i32, i32
  }
}

</mosaic_0001>

<bundles_post_ra>
// kernel: _forward_padded.1
= control target key start
LH: loop header
LB: loop body
LE: loop exit
PB: predicated region body
PF: predicated region fallthrough
CT: control target
= control target key end

     0   :  { %s2972_s0 = inlined_call_operand.vmem [shape: bf16[128,384], index: 0, kind: input, shape index: {}]   ;;  %s2973_s1 = inlined_call_operand.vmem [shape: bf16[384,512], index: 1, kind: input, shape index: {}]   ;;  %s2974_s2 = inlined_call_operand.vmem [shape: bf16[512,128], index: 2, kind: input, shape index: {}]   ;;  %s2975_s3 = inlined_call_operand.vmem [shape: f32[1,128], index: 3, kind: input, shape index: {}]   ;;  %s2976_s4 = inlined_call_operand.hbm [shape: f32[8,128], index: 4, kind: output, shape index: {}]  }
   0x1   :  { %v2216_v0 = vld [vmem:[%s2973_s1 + $0x4] ss:$16 sps:$4 sm:$0xff]   ;;  %v2218_v1 = vld [vmem:[%s2973_s1 + $0xc] ss:$16 sps:$4 sm:$0xff]   ;;  %v2220_v2 = vld [vmem:[%s2973_s1] ss:$16 sps:$4 sm:$0xff]  }
   0x2   :  { %755 = vmatprep.subr.bf16.mxu0 %v2216_v0  ;;  %v2221_v3 = vld [vmem:[%s2973_s1 + $0x8] ss:$16 sps:$4 sm:$0xff]   ;;  %981 = vmatprep.subr.bf16.mxu1 %v2218_v1  ;;  %v2222_v4 = vld [vmem:[%s2973_s1 + $0x24] ss:$16 sps:$4 sm:$0xff]   ;;  %v2224_v5 = vld [vmem:[%s2973_s1 + $0x2c] ss:$16 sps:$4 sm:$0xff]  }
   0x3   :  { %756 = vmatpush1.bf16.msra.mxu0 %v2220_v2  ;;  %982 = vmatpush1.bf16.msra.mxu1 %v2221_v3  ;;  %v2226_v6 = vld [vmem:[%s2973_s1 + $0x20] ss:$16 sps:$4 sm:$0xff]   ;;  %v2227_v7 = vld [vmem:[%s2973_s1 + $0x28] ss:$16 sps:$4 sm:$0xff]   ;;  %v2228_v8 = vld [vmem:[%s2973_s1 + $0x44] ss:$16 sps:$4 sm:$0xff]  }
   0x4   :  { %757 = vmatprep.subr.bf16.mxu0 %v2222_v4  ;;  %983 = vmatprep.subr.bf16.mxu1 %v2224_v5  ;;  %v2230_v9 = vld [vmem:[%s2973_s1 + $0x4c] ss:$16 sps:$4 sm:$0xff]   ;;  %v2232_v10 = vld [vmem:[%s2973_s1 + $0x40] ss:$16 sps:$4 sm:$0xff]   ;;  %v2233_v11 = vld [vmem:[%s2973_s1 + $0x48] ss:$16 sps:$4 sm:$0xff]  }
   0x5   :  { %v2234_v12 = vld [vmem:[%s2973_s1 + $0x64] ss:$16 sps:$4 sm:$0xff]   ;;  %v2236_v13 = vld [vmem:[%s2973_s1 + $0x6c] ss:$16 sps:$4 sm:$0xff]   ;;  %v2238_v14 = vld [vmem:[%s2973_s1 + $0x60] ss:$16 sps:$4 sm:$0xff]  }
   0x6   :  { %v2239_v15 = vld [vmem:[%s2973_s1 + $0x68] ss:$16 sps:$4 sm:$0xff]   ;;  %v2240_v16 = vld [vmem:[%s2973_s1 + $0x84] ss:$16 sps:$4 sm:$0xff]   ;;  %v2242_v17 = vld [vmem:[%s2973_s1 + $0x8c] ss:$16 sps:$4 sm:$0xff]  }
   0x7   :  { %758 = vmatpush1.bf16.msra.mxu0 %v2226_v6  ;;  %984 = vmatpush1.bf16.msra.mxu1 %v2227_v7  ;;  %v2244_v18 = vld [vmem:[%s2973_s1 + $0x80] ss:$16 sps:$4 sm:$0xff]   ;;  %v2245_v19 = vld [vmem:[%s2973_s1 + $0x88] ss:$16 sps:$4 sm:$0xff]   ;;  %v2246_v20 = vld [vmem:[%s2973_s1 + $0xa4] ss:$16 sps:$4 sm:$0xff]  }
   0x8   :  { %759 = vmatprep.subr.bf16.mxu0 %v2228_v8  ;;  %985 = vmatprep.subr.bf16.mxu1 %v2230_v9  ;;  %v2248_v21 = vld [vmem:[%s2973_s1 + $0xac] ss:$16 sps:$4 sm:$0xff]   ;;  %v2250_v22 = vld [vmem:[%s2973_s1 + $0xa0] ss:$16 sps:$4 sm:$0xff]   ;;  %v2251_v23 = vld [vmem:[%s2973_s1 + $0xa8] ss:$16 sps:$4 sm:$0xff]  }
   0x9   :  { %v2252_v24 = vld [vmem:[%s2973_s1 + $0xc4] ss:$16 sps:$4 sm:$0xff]   ;;  %v2254_v25 = vld [vmem:[%s2973_s1 + $0xcc] ss:$16 sps:$4 sm:$0xff]   ;;  %v2256_v26 = vld [vmem:[%s2973_s1 + $0xc0] ss:$16 sps:$4 sm:$0xff]  }
   0xa   :  { %v2257_v27 = vld [vmem:[%s2973_s1 + $0xc8] ss:$16 sps:$4 sm:$0xff]   ;;  %v2258_v28 = vld [vmem:[%s2973_s1 + $0xe4] ss:$16 sps:$4 sm:$0xff]   ;;  %v2260_v29 = vld [vmem:[%s2973_s1 + $0xec] ss:$16 sps:$4 sm:$0xff]  }
   0xb   :  { %760 = vmatpush1.bf16.msra.mxu0 %v2232_v10  ;;  %986 = vmatpush1.bf16.msra.mxu1 %v2233_v11  ;;  %v2262_v30 = vld [vmem:[%s2973_s1 + $0xe0] ss:$16 sps:$4 sm:$0xff]   ;;  %v2263_v31 = vld [vmem:[%s2973_s1 + $0xe8] ss:$16 sps:$4 sm:$0xff]   ;;  %v2264_v32 = vld [vmem:[%s2973_s1 + $0x104] ss:$16 sps:$4 sm:$0xff]  }
   0xc   :  { %761 = vmatprep.subr.bf16.mxu0 %v2234_v12  ;;  %987 = vmatprep.subr.bf16.mxu1 %v2236_v13  ;;  %v2266_v33 = vld [vmem:[%s2973_s1 + $0x10c] ss:$16 sps:$4 sm:$0xff]   ;;  %v2268_v34 = vld [vmem:[%s2973_s1 + $0x100] ss:$16 sps:$4 sm:$0xff]   ;;  %v2269_v35 = vld [vmem:[%s2973_s1 + $0x108] ss:$16 sps:$4 sm:$0xff]  }
   0xd   :  { %v2270_v36 = vld [vmem:[%s2973_s1 + $0x124] ss:$16 sps:$4 sm:$0xff]   ;;  %v2272_v37 = vld [vmem:[%s2973_s1 + $0x12c] ss:$16 sps:$4 sm:$0xff]   ;;  %v2274_v38 = vld [vmem:[%s2973_s1 + $0x120] ss:$16 sps:$4 sm:$0xff]  }
   0xe   :  { %v2275_v39 = vld [vmem:[%s2973_s1 + $0x128] ss:$16 sps:$4 sm:$0xff]   ;;  %v2276_v40 = vld [vmem:[%s2973_s1 + $0x144] ss:$16 sps:$4 sm:$0xff]   ;;  %v2278_v41 = vld [vmem:[%s2973_s1 + $0x14c] ss:$16 sps:$4 sm:$0xff]  }
   0xf   :  { %762 = vmatpush1.bf16.msra.mxu0 %v2238_v14  ;;  %988 = vmatpush1.bf16.msra.mxu1 %v2239_v15  ;;  %v2280_v42 = vld [vmem:[%s2973_s1 + $0x140] ss:$16 sps:$4 sm:$0xff]   ;;  %v2281_v43 = vld [vmem:[%s2973_s1 + $0x148] ss:$16 sps:$4 sm:$0xff]   ;;  %v2282_v44 = vld [vmem:[%s2973_s1 + $0x164] ss:$16 sps:$4 sm:$0xff]  }
  0x10   :  { %763 = vmatprep.subr.bf16.mxu0 %v2240_v16  ;;  %989 = vmatprep.subr.bf16.mxu1 %v2242_v17  ;;  %v2284_v45 = vld [vmem:[%s2973_s1 + $0x16c] ss:$16 sps:$4 sm:$0xff]   ;;  %v2286_v46 = vld [vmem:[%s2973_s1 + $0x160] ss:$16 sps:$4 sm:$0xff]   ;;  %v2287_v47 = vld [vmem:[%s2973_s1 + $0x168] ss:$16 sps:$4 sm:$0xff]  }
  0x11   :  { %v2314_v48 = vld [vmem:[%s2972_s0 + $0x4] ss:$12 sps:$4 sm:$0xff]   ;;  %v2290_v50 = vld [vmem:[%s2973_s1 + $0x18c] ss:$16 sps:$4 sm:$0xff]   ;;  %v2293_v52 = vld [vmem:[%s2973_s1 + $0x188] ss:$16 sps:$4 sm:$0xff]  }
  0x12   :  { %v2288_v49 = vld [vmem:[%s2973_s1 + $0x184] ss:$16 sps:$4 sm:$0xff]   ;;  %787 = vmatprep.mubr.bf16.mxu0 %v2314_v48  ;;  %1013 = vmatprep.mubr.bf16.mxu1 %v2314_v48  ;;  %v2292_v51 = vld [vmem:[%s2973_s1 + $0x180] ss:$16 sps:$4 sm:$0xff]   ;;  %v2296_v54 = vld [vmem:[%s2973_s1 + $0x1ac] ss:$16 sps:$4 sm:$0xff]  }
  0x13   :  { %764 = vmatpush1.bf16.msra.mxu0 %v2244_v18  ;;  %990 = vmatpush1.bf16.msra.mxu1 %v2245_v19  ;;  %v2294_v53 = vld [vmem:[%s2973_s1 + $0x1a4] ss:$16 sps:$4 sm:$0xff]   ;;  %v2298_v55 = vld [vmem:[%s2973_s1 + $0x1a0] ss:$16 sps:$4 sm:$0xff]   ;;  %v2299_v56 = vld [vmem:[%s2973_s1 + $0x1a8] ss:$16 sps:$4 sm:$0xff]  }
  0x14   :  { %765 = vmatprep.subr.bf16.mxu0 %v2246_v20  ;;  %991 = vmatprep.subr.bf16.mxu1 %v2248_v21  ;;  %v2300_v57 = vld [vmem:[%s2973_s1 + $0x1c4] ss:$16 sps:$4 sm:$0xff]   ;;  %v2302_v58 = vld [vmem:[%s2973_s1 + $0x1cc] ss:$16 sps:$4 sm:$0xff]   ;;  %v2304_v59 = vld [vmem:[%s2973_s1 + $0x1c0] ss:$16 sps:$4 sm:$0xff]  }
  0x15   :  { %v2305_v60 = vld [vmem:[%s2973_s1 + $0x1c8] ss:$16 sps:$4 sm:$0xff]   ;;  %v2306_v61 = vld [vmem:[%s2973_s1 + $0x1e4] ss:$16 sps:$4 sm:$0xff]   ;;  %v2308_v62 = vld [vmem:[%s2973_s1 + $0x1ec] ss:$16 sps:$4 sm:$0xff]  }
  0x16   :  { %v2310_v63 = vld [vmem:[%s2973_s1 + $0x1e0] ss:$16 sps:$4 sm:$0xff]   ;;  %v2311_v0 = vld [vmem:[%s2973_s1 + $0x1e8] ss:$16 sps:$4 sm:$0xff]   ;;  %v2317_v1 = vld [vmem:[%s2973_s1 + $0x204] ss:$16 sps:$4 sm:$0xff]  }
  0x17   :  { %766 = vmatpush1.bf16.msra.mxu0 %v2250_v22  ;;  %992 = vmatpush1.bf16.msra.mxu1 %v2251_v23  ;;  %v2320_v2 = vld [vmem:[%s2973_s1 + $0x20c] ss:$16 sps:$4 sm:$0xff]   ;;  %v2315_v4 = vld [vmem:[%s2973_s1 + $0x200] ss:$16 sps:$4 sm:$0xff]   ;;  %v2318_v5 = vld [vmem:[%s2973_s1 + $0x208] ss:$16 sps:$4 sm:$0xff]  }
  0x18   :  { %767 = vmatprep.subr.bf16.mxu0 %v2252_v24  ;;  %993 = vmatprep.subr.bf16.mxu1 %v2254_v25  ;;  %v2312_v3 = vld [vmem:[%s2972_s0] ss:$12 sps:$4 sm:$0xff]   ;;  %v2321_v6 = vld [vmem:[%s2972_s0 + $0x1c] ss:$12 sps:$4 sm:$0xff]   ;;  %v2326_v7 = vld [vmem:[%s2973_s1 + $0x224] ss:$16 sps:$4 sm:$0xff]  }
  0x19   :  { %v2329_v8 = vld [vmem:[%s2973_s1 + $0x22c] ss:$16 sps:$4 sm:$0xff]   ;;  %v2324_v9 = vld [vmem:[%s2973_s1 + $0x220] ss:$16 sps:$4 sm:$0xff]   ;;  %v2327_v10 = vld [vmem:[%s2973_s1 + $0x228] ss:$16 sps:$4 sm:$0xff]  }
  0x1a   :  { %v2335_v11 = vld [vmem:[%s2973_s1 + $0x244] ss:$16 sps:$4 sm:$0xff]   ;;  %v2338_v12 = vld [vmem:[%s2973_s1 + $0x24c] ss:$16 sps:$4 sm:$0xff]   ;;  %v2333_v15 = vld [vmem:[%s2973_s1 + $0x240] ss:$16 sps:$4 sm:$0xff]  }
  0x1b   :  { %768 = vmatpush1.bf16.msra.mxu0 %v2256_v26  ;;  %994 = vmatpush1.bf16.msra.mxu1 %v2257_v27  ;;  %v2323_v13 = vld [vmem:[%s2972_s0 + $0x18] ss:$12 sps:$4 sm:$0xff]   ;;  %v2330_v14 = vld [vmem:[%s2972_s0 + $0x34] ss:$12 sps:$4 sm:$0xff]   ;;  %v2347_v18 = vld [vmem:[%s2973_s1 + $0x26c] ss:$16 sps:$4 sm:$0xff]  }
  0x1c   :  { %769 = vmatprep.subr.bf16.mxu0 %v2258_v28  ;;  %995 = vmatprep.subr.bf16.mxu1 %v2260_v29  ;;  %v2336_v16 = vld [vmem:[%s2973_s1 + $0x248] ss:$16 sps:$4 sm:$0xff]   ;;  %v2344_v17 = vld [vmem:[%s2973_s1 + $0x264] ss:$16 sps:$4 sm:$0xff]   ;;  %v2342_v19 = vld [vmem:[%s2973_s1 + $0x260] ss:$16 sps:$4 sm:$0xff]  }
  0x1d   :  { %v2345_v20 = vld [vmem:[%s2973_s1 + $0x268] ss:$16 sps:$4 sm:$0xff]   ;;  %v2332_v21 = vld [vmem:[%s2972_s0 + $0x30] ss:$12 sps:$4 sm:$0xff]   ;;  %v2353_v22 = vld [vmem:[%s2973_s1 + $0x284] ss:$16 sps:$4 sm:$0xff]  }
  0x1e   :  { %v2339_v23 = vld [vmem:[%s2972_s0 + $0x4c] ss:$12 sps:$4 sm:$0xff]   ;;  %v2351_v25 = vld [vmem:[%s2973_s1 + $0x280] ss:$16 sps:$4 sm:$0xff]   ;;  %v2362_v27 = vld [vmem:[%s2973_s1 + $0x2a4] ss:$16 sps:$4 sm:$0xff]  }
  0x1f   :  { %770 = vmatpush1.bf16.msra.mxu0 %v2262_v30  ;;  %996 = vmatpush1.bf16.msra.mxu1 %v2263_v31  ;;  %v2356_v24 = vld [vmem:[%s2973_s1 + $0x28c] ss:$16 sps:$4 sm:$0xff]   ;;  %v2354_v26 = vld [vmem:[%s2973_s1 + $0x288] ss:$16 sps:$4 sm:$0xff]   ;;  %v2360_v29 = vld [vmem:[%s2973_s1 + $0x2a0] ss:$16 sps:$4 sm:$0xff]  }
  0x20   :  { %771 = vmatprep.subr.bf16.mxu0 %v2264_v32  ;;  %997 = vmatprep.subr.bf16.mxu1 %v2266_v33  ;;  %v2365_v28 = vld [vmem:[%s2973_s1 + $0x2ac] ss:$16 sps:$4 sm:$0xff]   ;;  %v2363_v30 = vld [vmem:[%s2973_s1 + $0x2a8] ss:$16 sps:$4 sm:$0xff]   ;;  %v2371_v32 = vld [vmem:[%s2973_s1 + $0x2c4] ss:$16 sps:$4 sm:$0xff]  }
  0x21   :  { %v2341_v31 = vld [vmem:[%s2972_s0 + $0x48] ss:$12 sps:$4 sm:$0xff]   ;;  %v2348_v33 = vld [vmem:[%s2972_s0 + $0x64] ss:$12 sps:$4 sm:$0xff]   ;;  %v2375_v48 = vld [vmem:[%s2972_s0 + $0xac] ss:$12 sps:$4 sm:$0xff]  }
  0x23   :  { %772 = vmatpush1.bf16.msra.mxu0 %v2268_v34  ;;  %998 = vmatpush1.bf16.msra.mxu1 %v2269_v35  ;;  %v2374_v34 = vld [vmem:[%s2973_s1 + $0x2cc] ss:$16 sps:$4 sm:$0xff]   ;;  %v2369_v35 = vld [vmem:[%s2973_s1 + $0x2c0] ss:$16 sps:$4 sm:$0xff]  }
  0x24   :  { %773 = vmatprep.subr.bf16.mxu0 %v2270_v36  ;;  %999 = vmatprep.subr.bf16.mxu1 %v2272_v37  ;;  %v2372_v36 = vld [vmem:[%s2973_s1 + $0x2c8] ss:$16 sps:$4 sm:$0xff]   ;;  %v2380_v37 = vld [vmem:[%s2973_s1 + $0x2e4] ss:$16 sps:$4 sm:$0xff]  }
  0x27   :  { %774 = vmatpush1.bf16.msra.mxu0 %v2274_v38  ;;  %1000 = vmatpush1.bf16.msra.mxu1 %v2275_v39  ;;  %v2383_v38 = vld [vmem:[%s2973_s1 + $0x2ec] ss:$16 sps:$4 sm:$0xff]   ;;  %v2378_v39 = vld [vmem:[%s2973_s1 + $0x2e0] ss:$16 sps:$4 sm:$0xff]  }
  0x28   :  { %775 = vmatprep.subr.bf16.mxu0 %v2276_v40  ;;  %1001 = vmatprep.subr.bf16.mxu1 %v2278_v41  ;;  %v2381_v40 = vld [vmem:[%s2973_s1 + $0x2e8] ss:$16 sps:$4 sm:$0xff]   ;;  %v2392_v41 = vld [vmem:[%s2974_s2 + $0x40] sm:$0xff]  }
  0x2b   :  { %776 = vmatpush1.bf16.msra.mxu0 %v2280_v42  ;;  %1002 = vmatpush1.bf16.msra.mxu1 %v2281_v43  ;;  %v2393_v42 = vld [vmem:[%s2974_s2 + $0xc0] sm:$0xff]  }
  0x2c   :  { %777 = vmatprep.subr.bf16.mxu0 %v2282_v44  ;;  %1003 = vmatprep.subr.bf16.mxu1 %v2284_v45  ;;  %v2350_v43 = vld [vmem:[%s2972_s0 + $0x60] ss:$12 sps:$4 sm:$0xff]   ;;  %v2357_v44 = vld [vmem:[%s2972_s0 + $0x7c] ss:$12 sps:$4 sm:$0xff]   ;;  %v2359_v45 = vld [vmem:[%s2972_s0 + $0x78] ss:$12 sps:$4 sm:$0xff]  }
  0x2f   :  { %778 = vmatpush1.bf16.msra.mxu0 %v2286_v46  ;;  %1004 = vmatpush1.bf16.msra.mxu1 %v2287_v47  ;;  %v2366_v46 = vld [vmem:[%s2972_s0 + $0x94] ss:$12 sps:$4 sm:$0xff]   ;;  %v2368_v47 = vld [vmem:[%s2972_s0 + $0x90] ss:$12 sps:$4 sm:$0xff]  }
  0x30   :  { %779 = vmatprep.subr.bf16.mxu0 %v2288_v49  ;;  %1005 = vmatprep.subr.bf16.mxu1 %v2290_v50 }
  0x33   :  { %780 = vmatpush1.bf16.msra.mxu0 %v2292_v51  ;;  %1006 = vmatpush1.bf16.msra.mxu1 %v2293_v52 }
  0x34   :  { %781 = vmatprep.subr.bf16.mxu0 %v2294_v53  ;;  %1007 = vmatprep.subr.bf16.mxu1 %v2296_v54 }
  0x37   :  { %782 = vmatpush1.bf16.msra.mxu0 %v2298_v55  ;;  %1008 = vmatpush1.bf16.msra.mxu1 %v2299_v56 }
  0x38   :  { %783 = vmatprep.subr.bf16.mxu0 %v2300_v57  ;;  %1009 = vmatprep.subr.bf16.mxu1 %v2302_v58 }
  0x3b   :  { %784 = vmatpush1.bf16.msra.mxu0 %v2304_v59  ;;  %1010 = vmatpush1.bf16.msra.mxu1 %v2305_v60 }
  0x3c   :  { %785 = vmatprep.subr.bf16.mxu0 %v2306_v61  ;;  %1011 = vmatprep.subr.bf16.mxu1 %v2308_v62 }
  0x3f   :  { %786 = vmatpush1.bf16.msra.mxu0 %v2310_v63  ;;  %1012 = vmatpush1.bf16.msra.mxu1 %v2311_v0 }
  0x40   :  { %868 = vmatprep.subr.bf16.mxu0 %v2317_v1  ;;  %1094 = vmatprep.subr.bf16.mxu1 %v2320_v2 }
  0x42   :  { %788 = vmatmul.mubr.bf16.vlgmr.msra.gmra.mrb[0].mxu0 %v2312_v3  ;;  %1014 = vmatmul.mubr.bf16.vlgmr.msra.gmra.mrb[0].mxu1 %v2312_v3 }
  0x43   :  { %869 = vmatpush1.bf16.msra.mxu0 %v2315_v4  ;;  %1095 = vmatpush1.bf16.msra.mxu1 %v2318_v5 }
  0x44   :  { %797 = vmatprep.mubr.bf16.mxu0 %v2321_v6  ;;  %1023 = vmatprep.mubr.bf16.mxu1 %v2321_v6 }
  0x45   :  { %870 = vmatprep.subr.bf16.mxu0 %v2326_v7  ;;  %1096 = vmatprep.subr.bf16.mxu1 %v2329_v8 }
  0x47   :  { %871 = vmatpush1.bf16.msra.mxu0 %v2324_v9  ;;  %1097 = vmatpush1.bf16.msra.mxu1 %v2327_v10 }
  0x48   :  { %872 = vmatprep.subr.bf16.mxu0 %v2335_v11  ;;  %1098 = vmatprep.subr.bf16.mxu1 %v2338_v12 }
  0x4a   :  { %798 = vmatmul.mubr.bf16.gmra.mrb[4].mxu0 %v2323_v13  ;;  %1024 = vmatmul.mubr.bf16.gmra.mrb[4].mxu1 %v2323_v13 }
  0x4b   :  { %807 = vmatprep.mubr.bf16.mxu0 %v2330_v14  ;;  %1033 = vmatprep.mubr.bf16.mxu1 %v2330_v14 }
  0x4c   :  { %873 = vmatpush1.bf16.msra.mxu0 %v2333_v15  ;;  %1099 = vmatpush1.bf16.msra.mxu1 %v2336_v16 }
  0x4d   :  { %874 = vmatprep.subr.bf16.mxu0 %v2344_v17  ;;  %1100 = vmatprep.subr.bf16.mxu1 %v2347_v18 }
  0x50   :  { %875 = vmatpush1.bf16.msra.mxu0 %v2342_v19  ;;  %1101 = vmatpush1.bf16.msra.mxu1 %v2345_v20 }
  0x51   :  { %876 = vmatprep.subr.bf16.mxu0 %v2353_v22  ;;  %1102 = vmatprep.subr.bf16.mxu1 %v2356_v24 }
  0x52   :  { %808 = vmatmul.mubr.bf16.gmra.mrb[8].mxu0 %v2332_v21  ;;  %1034 = vmatmul.mubr.bf16.gmra.mrb[8].mxu1 %v2332_v21 }
  0x53   :  { %817 = vmatprep.mubr.bf16.mxu0 %v2339_v23  ;;  %1043 = vmatprep.mubr.bf16.mxu1 %v2339_v23 }
  0x54   :  { %877 = vmatpush1.bf16.msra.mxu0 %v2351_v25  ;;  %1103 = vmatpush1.bf16.msra.mxu1 %v2354_v26 }
  0x55   :  { %878 = vmatprep.subr.bf16.mxu0 %v2362_v27  ;;  %1104 = vmatprep.subr.bf16.mxu1 %v2365_v28 }
  0x58   :  { %879 = vmatpush1.bf16.msra.mxu0 %v2360_v29  ;;  %1105 = vmatpush1.bf16.msra.mxu1 %v2363_v30 }
  0x59   :  { %880 = vmatprep.subr.bf16.mxu0 %v2371_v32  ;;  %1106 = vmatprep.subr.bf16.mxu1 %v2374_v34 }
  0x5a   :  { %818 = vmatmul.mubr.bf16.gmra.mrb[12].mxu0 %v2341_v31  ;;  %1044 = vmatmul.mubr.bf16.gmra.mrb[12].mxu1 %v2341_v31 }
  0x5b   :  { %827 = vmatprep.mubr.bf16.mxu0 %v2348_v33  ;;  %1053 = vmatprep.mubr.bf16.mxu1 %v2348_v33 }
  0x5c   :  { %881 = vmatpush1.bf16.msra.mxu0 %v2369_v35  ;;  %1107 = vmatpush1.bf16.msra.mxu1 %v2372_v36 }
  0x5d   :  { %882 = vmatprep.subr.bf16.mxu0 %v2380_v37  ;;  %1108 = vmatprep.subr.bf16.mxu1 %v2383_v38 }
  0x60   :  { %883 = vmatpush1.bf16.msra.mxu0 %v2378_v39  ;;  %1109 = vmatpush1.bf16.msra.mxu1 %v2381_v40 }
  0x61   :  { %2022 = vmatprep.subr.bf16.mxu0 %v2392_v41  ;;  %2086 = vmatprep.subr.bf16.mxu1 %v2393_v42 }
  0x62   :  { %828 = vmatmul.mubr.bf16.gmra.mrb[16].mxu0 %v2350_v43  ;;  %1054 = vmatmul.mubr.bf16.gmra.mrb[16].mxu1 %v2350_v43 }
  0x63   :  { %837 = vmatprep.mubr.bf16.mxu0 %v2357_v44  ;;  %1063 = vmatprep.mubr.bf16.mxu1 %v2357_v44 }
  0x6a   :  { %838 = vmatmul.mubr.bf16.gmra.mrb[20].mxu0 %v2359_v45  ;;  %1064 = vmatmul.mubr.bf16.gmra.mrb[20].mxu1 %v2359_v45 }
  0x6b   :  { %847 = vmatprep.mubr.bf16.mxu0 %v2366_v46  ;;  %1073 = vmatprep.mubr.bf16.mxu1 %v2366_v46 }
  0x6c   :  { %9 = vsyncpa [#allocation3], 0  ;;  %v2377_v49 = vld [vmem:[%s2972_s0 + $0xa8] ss:$12 sps:$4 sm:$0xff]   ;;  %v2448_v50 = vmov 0   ;;  %v2394_v52 = vld [vmem:[%s2974_s2] sm:$0xff]  }
  0x6d   :  { %v2384_v51 = vld [vmem:[%s2972_s0 + $0x8] ss:$12 sps:$4 sm:$0xff]   ;;  %v2395_v53 = vld [vmem:[%s2974_s2 + $0x80] sm:$0xff]   ;;  %v2404_v63 = vld [vmem:[%s2974_s2 + $0x58] sm:$0xff]   ;;  %vm1833_vm0 = vcmask 1041409   ;;  %vm1836_vm1 = vcmask 1042434  }
  0x6e   :  { %v2396_v54 = vld [vmem:[%s2974_s2 + $0x48] sm:$0xff]   ;;  %v2400_v58 = vld [vmem:[%s2974_s2 + $0x50] sm:$0xff]   ;;  %v2405_v0 = vld [vmem:[%s2974_s2 + $0xd8] sm:$0xff]   ;;  %vm1839_vm2 = vcmask 1043459   ;;  %vm1842_vm3 = vcmask 1044484   ;;  %vm1845_vm4 = vcmask 1045509  }
  0x6f   :  { %v2397_v55 = vld [vmem:[%s2974_s2 + $0xc8] sm:$0xff]   ;;  %v2401_v59 = vld [vmem:[%s2974_s2 + $0xd0] sm:$0xff]   ;;  %v2406_v1 = vld [vmem:[%s2974_s2 + $0x18] sm:$0xff]   ;;  %vm1848_vm5 = vcmask 1046534   ;;  %vm1851_vm6 = vcmask 1047559  }
  0x70   :  { %v2398_v56 = vld [vmem:[%s2974_s2 + $0x8] sm:$0xff]   ;;  %v2402_v61 = vld [vmem:[%s2974_s2 + $0x10] sm:$0xff]   ;;  %v2407_v2 = vld [vmem:[%s2974_s2 + $0x98] sm:$0xff]  }
  0x71   :  { %v2399_v57 = vld [vmem:[%s2974_s2 + $0x88] sm:$0xff]   ;;  %v2403_v62 = vld [vmem:[%s2974_s2 + $0x90] sm:$0xff]   ;;  %v2408_v3 = vld [vmem:[%s2974_s2 + $0x60] sm:$0xff]  }
  0x72   :  { %848 = vmatmul.mubr.bf16.gmra.mrb[24].mxu0 %v2368_v47  ;;  %1074 = vmatmul.mubr.bf16.gmra.mrb[24].mxu1 %v2368_v47  ;;  %v2385_v60 = vld [vmem:[%s2972_s0 + $0x20] ss:$12 sps:$4 sm:$0xff]   ;;  %v2386_v5 = vld [vmem:[%s2972_s0 + $0x38] ss:$12 sps:$4 sm:$0xff]   ;;  %v2416_v12 = vld [vmem:[%s2974_s2 + $0x70] sm:$0xff]  }
  0x73   :  { %857 = vmatprep.mubr.bf16.mxu0 %v2375_v48  ;;  %1083 = vmatprep.mubr.bf16.mxu1 %v2375_v48  ;;  %v2409_v4 = vld [vmem:[%s2974_s2 + $0xe0] sm:$0xff]   ;;  %v2412_v8 = vld [vmem:[%s2974_s2 + $0x68] sm:$0xff]   ;;  %v2417_v13 = vld [vmem:[%s2974_s2 + $0xf0] sm:$0xff]  }
  0x74   :  { %v2410_v6 = vld [vmem:[%s2974_s2 + $0x20] sm:$0xff]   ;;  %v2413_v9 = vld [vmem:[%s2974_s2 + $0xe8] sm:$0xff]   ;;  %v2387_v14 = vld [vmem:[%s2972_s0 + $0x50] ss:$12 sps:$4 sm:$0xff]  }
  0x75   :  { %v2411_v7 = vld [vmem:[%s2974_s2 + $0xa0] sm:$0xff]   ;;  %v2414_v10 = vld [vmem:[%s2974_s2 + $0x28] sm:$0xff]   ;;  %v2418_v15 = vld [vmem:[%s2974_s2 + $0x30] sm:$0xff]  }
  0x76   :  { %v2415_v11 = vld [vmem:[%s2974_s2 + $0xa8] sm:$0xff]   ;;  %v2419_v16 = vld [vmem:[%s2974_s2 + $0xb0] sm:$0xff]   ;;  %v2390_v19 = vld [vmem:[%s2972_s0 + $0x98] ss:$12 sps:$4 sm:$0xff]  }
  0x77   :  { %v2388_v17 = vld [vmem:[%s2972_s0 + $0x68] ss:$12 sps:$4 sm:$0xff]   ;;  %v2389_v18 = vld [vmem:[%s2972_s0 + $0x80] ss:$12 sps:$4 sm:$0xff]   ;;  %v2391_v20 = vld [vmem:[%s2972_s0 + $0xb0] ss:$12 sps:$4 sm:$0xff]  }
  0x78   :  { %v2420_v21 = vld [vmem:[%s2974_s2 + $0x78] sm:$0xff]  }
  0x79   :  { %v2421_v22 = vld [vmem:[%s2974_s2 + $0xf8] sm:$0xff]  }
  0x7a   :  { %858 = vmatmul.mubr.bf16.gmra.mrb[28].mxu0 %v2377_v49  ;;  %1084 = vmatmul.mubr.bf16.gmra.mrb[28].mxu1 %v2377_v49  ;;  %v2422_v23 = vld [vmem:[%s2974_s2 + $0x38] sm:$0xff]  }
  0x7b   :  { %900 = vmatprep.mubr.bf16.mxu0 %v2448_v50  ;;  %1126 = vmatprep.mubr.bf16.mxu1 %v2448_v50  ;;  %v2423_v24 = vld [vmem:[%s2974_s2 + $0xb8] sm:$0xff]  }
  0x82   :  { %901 = vmatmul.mubr.bf16.vlgmr.msra.gmra.mrb[0].mxu0 %v2384_v51  ;;  %1127 = vmatmul.mubr.bf16.vlgmr.msra.gmra.mrb[0].mxu1 %v2384_v51 }
  0x83   :  { %910 = vmatprep.mubr.bf16.mxu0 %v2448_v50  ;;  %1136 = vmatprep.mubr.bf16.mxu1 %v2448_v50 }
  0x84   :  { %2023 = vmatpush3.bf16.msra.mxu0 %v2394_v52  ;;  %2087 = vmatpush3.bf16.msra.mxu1 %v2395_v53 }
  0x85   :  { %2024 = vmatprep.subr.bf16.mxu0 %v2396_v54  ;;  %2088 = vmatprep.subr.bf16.mxu1 %v2397_v55 }
  0x88   :  { %2025 = vmatpush3.bf16.msra.mxu0 %v2398_v56  ;;  %2089 = vmatpush3.bf16.msra.mxu1 %v2399_v57 }
  0x89   :  { %2026 = vmatprep.subr.bf16.mxu0 %v2400_v58  ;;  %2090 = vmatprep.subr.bf16.mxu1 %v2401_v59 }
  0x8a   :  { %911 = vmatmul.mubr.bf16.gmra.mrb[4].mxu0 %v2385_v60  ;;  %1137 = vmatmul.mubr.bf16.gmra.mrb[4].mxu1 %v2385_v60 }
  0x8b   :  { %920 = vmatprep.mubr.bf16.mxu0 %v2448_v50  ;;  %1146 = vmatprep.mubr.bf16.mxu1 %v2448_v50 }
  0x8c   :  { %2027 = vmatpush3.bf16.msra.mxu0 %v2402_v61  ;;  %2091 = vmatpush3.bf16.msra.mxu1 %v2403_v62 }
  0x8d   :  { %2028 = vmatprep.subr.bf16.mxu0 %v2404_v63  ;;  %2092 = vmatprep.subr.bf16.mxu1 %v2405_v0 }
  0x90   :  { %2029 = vmatpush3.bf16.msra.mxu0 %v2406_v1  ;;  %2093 = vmatpush3.bf16.msra.mxu1 %v2407_v2 }
  0x91   :  { %2030 = vmatprep.subr.bf16.mxu0 %v2408_v3  ;;  %2094 = vmatprep.subr.bf16.mxu1 %v2409_v4 }
  0x92   :  { %921 = vmatmul.mubr.bf16.gmra.mrb[8].mxu0 %v2386_v5  ;;  %1147 = vmatmul.mubr.bf16.gmra.mrb[8].mxu1 %v2386_v5 }
  0x93   :  { %930 = vmatprep.mubr.bf16.mxu0 %v2448_v50  ;;  %1156 = vmatprep.mubr.bf16.mxu1 %v2448_v50 }
  0x94   :  { %2031 = vmatpush3.bf16.msra.mxu0 %v2410_v6  ;;  %2095 = vmatpush3.bf16.msra.mxu1 %v2411_v7 }
  0x95   :  { %2032 = vmatprep.subr.bf16.mxu0 %v2412_v8  ;;  %2096 = vmatprep.subr.bf16.mxu1 %v2413_v9 }
  0x98   :  { %2033 = vmatpush3.bf16.msra.mxu0 %v2414_v10  ;;  %2097 = vmatpush3.bf16.msra.mxu1 %v2415_v11 }
  0x99   :  { %2034 = vmatprep.subr.bf16.mxu0 %v2416_v12  ;;  %2098 = vmatprep.subr.bf16.mxu1 %v2417_v13 }
  0x9a   :  { %931 = vmatmul.mubr.bf16.gmra.mrb[12].mxu0 %v2387_v14  ;;  %1157 = vmatmul.mubr.bf16.gmra.mrb[12].mxu1 %v2387_v14 }
  0x9b   :  { %940 = vmatprep.mubr.bf16.mxu0 %v2448_v50  ;;  %1166 = vmatprep.mubr.bf16.mxu1 %v2448_v50 }
  0x9c   :  { %2035 = vmatpush3.bf16.msra.mxu0 %v2418_v15  ;;  %2099 = vmatpush3.bf16.msra.mxu1 %v2419_v16 }
  0x9d   :  { %2036 = vmatprep.subr.bf16.mxu0 %v2420_v21  ;;  %2100 = vmatprep.subr.bf16.mxu1 %v2421_v22 }
  0xa0   :  { %2037 = vmatpush3.bf16.msra.mxu0 %v2422_v23  ;;  %2101 = vmatpush3.bf16.msra.mxu1 %v2423_v24 }
  0xa2   :  { %941 = vmatmul.mubr.bf16.gmra.mrb[16].mxu0 %v2388_v17  ;;  %1167 = vmatmul.mubr.bf16.gmra.mrb[16].mxu1 %v2388_v17 }
  0xa3   :  { %950 = vmatprep.mubr.bf16.mxu0 %v2448_v50  ;;  %1176 = vmatprep.mubr.bf16.mxu1 %v2448_v50 }
  0xaa   :  { %951 = vmatmul.mubr.bf16.gmra.mrb[20].mxu0 %v2389_v18  ;;  %1177 = vmatmul.mubr.bf16.gmra.mrb[20].mxu1 %v2389_v18 }
  0xab   :  { %960 = vmatprep.mubr.bf16.mxu0 %v2448_v50  ;;  %1186 = vmatprep.mubr.bf16.mxu1 %v2448_v50 }
  0xb2   :  { %961 = vmatmul.mubr.bf16.gmra.mrb[24].mxu0 %v2390_v19  ;;  %1187 = vmatmul.mubr.bf16.gmra.mrb[24].mxu1 %v2390_v19 }
  0xb3   :  { %970 = vmatprep.mubr.bf16.mxu0 %v2448_v50  ;;  %1196 = vmatprep.mubr.bf16.mxu1 %v2448_v50 }
  0xba   :  { %971 = vmatmul.mubr.bf16.gmra.mrb[28].mxu0 %v2391_v20  ;;  %1197 = vmatmul.mubr.bf16.gmra.mrb[28].mxu1 %v2391_v20 }
 0x155   :  { %v902_v25 = vpop.f32.mrb[0].mxu0  ;;  %v1128_v26 = vpop.f32.mrb[0].mxu1 }
 0x156   :  { %v904_v27 = vpop.f32.mrb[1].mxu0  ;;  %v1130_v28 = vpop.f32.mrb[1].mxu1  ;;  %v1207_v31 = vmax.f32 %v902_v25, 0.0  ;;  %v1209_v32 = vmax.f32 %v1128_v26, 0.0 }
 0x157   :  { %v906_v29 = vpop.f32.mrb[2].mxu0  ;;  %v1132_v30 = vpop.f32.mrb[2].mxu1  ;;  %v1208_v37 = vmax.f32 %v904_v27, 0.0  ;;  %v1210_v38 = vmax.f32 %v1130_v28, 0.0 }
 0x158   :  { %v1211_v33 = vmax.f32 %v906_v29, 0.0  ;;  %v1213_v34 = vmax.f32 %v1132_v30, 0.0  ;;  %v908_v35 = vpop.f32.mrb[3].mxu0  ;;  %v1134_v36 = vpop.f32.mrb[3].mxu1 }
 0x159   :  { %v1212_v39 = vmax.f32 %v908_v35, 0.0  ;;  %v1214_v40 = vmax.f32 %v1134_v36, 0.0 }
 0x15a   :  { %v1271_v41 = vpack.c.bf16 %v1211_v33, %v1207_v31  ;;  %v1273_v42 = vpack.c.bf16 %v1213_v34, %v1209_v32 }
 0x15b   :  { %v1272_v43 = vpack.c.bf16 %v1212_v39, %v1208_v37  ;;  %v1274_v44 = vpack.c.bf16 %v1214_v40, %v1210_v38 }
 0x15d   :  { %v912_v45 = vpop.f32.mrb[4].mxu0  ;;  %v1138_v46 = vpop.f32.mrb[4].mxu1  ;;  %1591 = vmatprep.mubr.bf16.mxu0 %v1272_v43  ;;  %1688 = vmatprep.mubr.bf16.mxu1 %v1274_v44 }
 0x15e   :  { %v914_v47 = vpop.f32.mrb[5].mxu0  ;;  %v1140_v48 = vpop.f32.mrb[5].mxu1  ;;  %1592 = vmatmul.mubr.bf16.vlgmr.msra.gmra.mrb[32].mxu0 %v1271_v41  ;;  %1689 = vmatmul.mubr.bf16.vlgmr.msra.gmra.mrb[32].mxu1 %v1273_v42  ;;  %v1215_v51 = vmax.f32 %v912_v45, 0.0  ;;  %v1217_v52 = vmax.f32 %v1138_v46, 0.0 }
 0x15f   :  { %v916_v49 = vpop.f32.mrb[6].mxu0  ;;  %v1142_v50 = vpop.f32.mrb[6].mxu1  ;;  %v1216_v57 = vmax.f32 %v914_v47, 0.0  ;;  %v1218_v58 = vmax.f32 %v1140_v48, 0.0 }
 0x160   :  { %v1219_v53 = vmax.f32 %v916_v49, 0.0  ;;  %v1221_v54 = vmax.f32 %v1142_v50, 0.0  ;;  %v918_v55 = vpop.f32.mrb[7].mxu0  ;;  %v1144_v56 = vpop.f32.mrb[7].mxu1 }
 0x161   :  { %v1220_v59 = vmax.f32 %v918_v55, 0.0  ;;  %v1222_v60 = vmax.f32 %v1144_v56, 0.0 }
 0x162   :  { %v1275_v61 = vpack.c.bf16 %v1219_v53, %v1215_v51  ;;  %v1277_v62 = vpack.c.bf16 %v1221_v54, %v1217_v52 }
 0x163   :  { %v1276_v63 = vpack.c.bf16 %v1220_v59, %v1216_v57  ;;  %v1278_v0 = vpack.c.bf16 %v1222_v60, %v1218_v58 }
 0x165   :  { %v922_v1 = vpop.f32.mrb[8].mxu0  ;;  %v1148_v2 = vpop.f32.mrb[8].mxu1  ;;  %1599 = vmatprep.mubr.bf16.mxu0 %v1276_v63  ;;  %1696 = vmatprep.mubr.bf16.mxu1 %v1278_v0 }
 0x166   :  { %v924_v3 = vpop.f32.mrb[9].mxu0  ;;  %v1150_v4 = vpop.f32.mrb[9].mxu1  ;;  %1600 = vmatmul.mubr.bf16.gmra.mrb[36].mxu0 %v1275_v61  ;;  %1697 = vmatmul.mubr.bf16.gmra.mrb[36].mxu1 %v1277_v62  ;;  %v1223_v7 = vmax.f32 %v922_v1, 0.0  ;;  %v1225_v8 = vmax.f32 %v1148_v2, 0.0 }
 0x167   :  { %v926_v5 = vpop.f32.mrb[10].mxu0  ;;  %v1152_v6 = vpop.f32.mrb[10].mxu1  ;;  %v1224_v13 = vmax.f32 %v924_v3, 0.0  ;;  %v1226_v14 = vmax.f32 %v1150_v4, 0.0 }
 0x168   :  { %v1227_v9 = vmax.f32 %v926_v5, 0.0  ;;  %v1229_v10 = vmax.f32 %v1152_v6, 0.0  ;;  %v928_v11 = vpop.f32.mrb[11].mxu0  ;;  %v1154_v12 = vpop.f32.mrb[11].mxu1 }
 0x169   :  { %v1228_v15 = vmax.f32 %v928_v11, 0.0  ;;  %v1230_v16 = vmax.f32 %v1154_v12, 0.0 }
 0x16a   :  { %v1279_v17 = vpack.c.bf16 %v1227_v9, %v1223_v7  ;;  %v1281_v18 = vpack.c.bf16 %v1229_v10, %v1225_v8 }
 0x16b   :  { %v1280_v19 = vpack.c.bf16 %v1228_v15, %v1224_v13  ;;  %v1282_v20 = vpack.c.bf16 %v1230_v16, %v1226_v14 }
 0x16d   :  { %v932_v21 = vpop.f32.mrb[12].mxu0  ;;  %v1158_v22 = vpop.f32.mrb[12].mxu1  ;;  %1607 = vmatprep.mubr.bf16.mxu0 %v1280_v19  ;;  %1704 = vmatprep.mubr.bf16.mxu1 %v1282_v20 }
 0x16e   :  { %v934_v23 = vpop.f32.mrb[13].mxu0  ;;  %v1160_v24 = vpop.f32.mrb[13].mxu1  ;;  %1608 = vmatmul.mubr.bf16.gmra.mrb[40].mxu0 %v1279_v17  ;;  %1705 = vmatmul.mubr.bf16.gmra.mrb[40].mxu1 %v1281_v18  ;;  %v1231_v27 = vmax.f32 %v932_v21, 0.0  ;;  %v1233_v28 = vmax.f32 %v1158_v22, 0.0 }
 0x16f   :  { %v936_v25 = vpop.f32.mrb[14].mxu0  ;;  %v1162_v26 = vpop.f32.mrb[14].mxu1  ;;  %v1232_v33 = vmax.f32 %v934_v23, 0.0  ;;  %v1234_v34 = vmax.f32 %v1160_v24, 0.0 }
 0x170   :  { %v1235_v29 = vmax.f32 %v936_v25, 0.0  ;;  %v1237_v30 = vmax.f32 %v1162_v26, 0.0  ;;  %v938_v31 = vpop.f32.mrb[15].mxu0  ;;  %v1164_v32 = vpop.f32.mrb[15].mxu1 }
 0x171   :  { %v1236_v35 = vmax.f32 %v938_v31, 0.0  ;;  %v1238_v36 = vmax.f32 %v1164_v32, 0.0 }
 0x172   :  { %v1283_v37 = vpack.c.bf16 %v1235_v29, %v1231_v27  ;;  %v1285_v38 = vpack.c.bf16 %v1237_v30, %v1233_v28 }
 0x173   :  { %v1284_v39 = vpack.c.bf16 %v1236_v35, %v1232_v33  ;;  %v1286_v40 = vpack.c.bf16 %v1238_v36, %v1234_v34 }
 0x175   :  { %v942_v41 = vpop.f32.mrb[16].mxu0  ;;  %v1168_v42 = vpop.f32.mrb[16].mxu1  ;;  %1615 = vmatprep.mubr.bf16.mxu0 %v1284_v39  ;;  %1712 = vmatprep.mubr.bf16.mxu1 %v1286_v40 }
 0x176   :  { %v944_v43 = vpop.f32.mrb[17].mxu0  ;;  %v1170_v44 = vpop.f32.mrb[17].mxu1  ;;  %1616 = vmatmul.mubr.bf16.gmra.mrb[44].mxu0 %v1283_v37  ;;  %1713 = vmatmul.mubr.bf16.gmra.mrb[44].mxu1 %v1285_v38  ;;  %v1239_v47 = vmax.f32 %v942_v41, 0.0  ;;  %v1241_v48 = vmax.f32 %v1168_v42, 0.0 }
 0x177   :  { %v946_v45 = vpop.f32.mrb[18].mxu0  ;;  %v1172_v46 = vpop.f32.mrb[18].mxu1  ;;  %v1240_v53 = vmax.f32 %v944_v43, 0.0  ;;  %v1242_v54 = vmax.f32 %v1170_v44, 0.0 }
 0x178   :  { %v1243_v49 = vmax.f32 %v946_v45, 0.0  ;;  %v1245_v50 = vmax.f32 %v1172_v46, 0.0  ;;  %v948_v51 = vpop.f32.mrb[19].mxu0  ;;  %v1174_v52 = vpop.f32.mrb[19].mxu1 }
 0x179   :  { %v1244_v55 = vmax.f32 %v948_v51, 0.0  ;;  %v1246_v56 = vmax.f32 %v1174_v52, 0.0 }
 0x17a   :  { %v1287_v57 = vpack.c.bf16 %v1243_v49, %v1239_v47  ;;  %v1289_v58 = vpack.c.bf16 %v1245_v50, %v1241_v48 }
 0x17b   :  { %v1288_v59 = vpack.c.bf16 %v1244_v55, %v1240_v53  ;;  %v1290_v60 = vpack.c.bf16 %v1246_v56, %v1242_v54 }
 0x17d   :  { %v952_v61 = vpop.f32.mrb[20].mxu0  ;;  %v1178_v62 = vpop.f32.mrb[20].mxu1  ;;  %1623 = vmatprep.mubr.bf16.mxu0 %v1288_v59  ;;  %1720 = vmatprep.mubr.bf16.mxu1 %v1290_v60 }
 0x17e   :  { %v954_v63 = vpop.f32.mrb[21].mxu0  ;;  %v1180_v0 = vpop.f32.mrb[21].mxu1  ;;  %1624 = vmatmul.mubr.bf16.gmra.mrb[48].mxu0 %v1287_v57  ;;  %1721 = vmatmul.mubr.bf16.gmra.mrb[48].mxu1 %v1289_v58  ;;  %v1247_v3 = vmax.f32 %v952_v61, 0.0  ;;  %v1249_v4 = vmax.f32 %v1178_v62, 0.0 }
 0x17f   :  { %v956_v1 = vpop.f32.mrb[22].mxu0  ;;  %v1182_v2 = vpop.f32.mrb[22].mxu1  ;;  %v1248_v9 = vmax.f32 %v954_v63, 0.0  ;;  %v1250_v10 = vmax.f32 %v1180_v0, 0.0 }
 0x180   :  { %v1251_v5 = vmax.f32 %v956_v1, 0.0  ;;  %v1253_v6 = vmax.f32 %v1182_v2, 0.0  ;;  %v958_v7 = vpop.f32.mrb[23].mxu0  ;;  %v1184_v8 = vpop.f32.mrb[23].mxu1 }
 0x181   :  { %v1252_v11 = vmax.f32 %v958_v7, 0.0  ;;  %v1254_v12 = vmax.f32 %v1184_v8, 0.0 }
 0x182   :  { %v1291_v13 = vpack.c.bf16 %v1251_v5, %v1247_v3  ;;  %v1293_v14 = vpack.c.bf16 %v1253_v6, %v1249_v4 }
 0x183   :  { %v1292_v15 = vpack.c.bf16 %v1252_v11, %v1248_v9  ;;  %v1294_v16 = vpack.c.bf16 %v1254_v12, %v1250_v10 }
 0x185   :  { %v962_v17 = vpop.f32.mrb[24].mxu0  ;;  %v1188_v18 = vpop.f32.mrb[24].mxu1  ;;  %1631 = vmatprep.mubr.bf16.mxu0 %v1292_v15  ;;  %1728 = vmatprep.mubr.bf16.mxu1 %v1294_v16 }
 0x186   :  { %v964_v19 = vpop.f32.mrb[25].mxu0  ;;  %v1190_v20 = vpop.f32.mrb[25].mxu1  ;;  %1632 = vmatmul.mubr.bf16.gmra.mrb[52].mxu0 %v1291_v13  ;;  %1729 = vmatmul.mubr.bf16.gmra.mrb[52].mxu1 %v1293_v14  ;;  %v1255_v23 = vmax.f32 %v962_v17, 0.0  ;;  %v1257_v24 = vmax.f32 %v1188_v18, 0.0 }
 0x187   :  { %v966_v21 = vpop.f32.mrb[26].mxu0  ;;  %v1192_v22 = vpop.f32.mrb[26].mxu1  ;;  %v1256_v29 = vmax.f32 %v964_v19, 0.0  ;;  %v1258_v30 = vmax.f32 %v1190_v20, 0.0 }
 0x188   :  { %v1259_v25 = vmax.f32 %v966_v21, 0.0  ;;  %v1261_v26 = vmax.f32 %v1192_v22, 0.0  ;;  %v968_v27 = vpop.f32.mrb[27].mxu0  ;;  %v1194_v28 = vpop.f32.mrb[27].mxu1 }
 0x189   :  { %v1260_v31 = vmax.f32 %v968_v27, 0.0  ;;  %v1262_v32 = vmax.f32 %v1194_v28, 0.0 }
 0x18a   :  { %v1295_v33 = vpack.c.bf16 %v1259_v25, %v1255_v23  ;;  %v1297_v34 = vpack.c.bf16 %v1261_v26, %v1257_v24 }
 0x18b   :  { %v1296_v35 = vpack.c.bf16 %v1260_v31, %v1256_v29  ;;  %v1298_v36 = vpack.c.bf16 %v1262_v32, %v1258_v30 }
 0x18d   :  { %v972_v37 = vpop.f32.mrb[28].mxu0  ;;  %v1198_v38 = vpop.f32.mrb[28].mxu1  ;;  %1639 = vmatprep.mubr.bf16.mxu0 %v1296_v35  ;;  %1736 = vmatprep.mubr.bf16.mxu1 %v1298_v36 }
 0x18e   :  { %v974_v39 = vpop.f32.mrb[29].mxu0  ;;  %v1200_v40 = vpop.f32.mrb[29].mxu1  ;;  %1640 = vmatmul.mubr.bf16.gmra.mrb[56].mxu0 %v1295_v33  ;;  %1737 = vmatmul.mubr.bf16.gmra.mrb[56].mxu1 %v1297_v34  ;;  %v1263_v43 = vmax.f32 %v972_v37, 0.0  ;;  %v1265_v44 = vmax.f32 %v1198_v38, 0.0 }
 0x18f   :  { %v976_v41 = vpop.f32.mrb[30].mxu0  ;;  %v1202_v42 = vpop.f32.mrb[30].mxu1  ;;  %v1264_v49 = vmax.f32 %v974_v39, 0.0  ;;  %v1266_v50 = vmax.f32 %v1200_v40, 0.0 }
 0x190   :  { %v1267_v45 = vmax.f32 %v976_v41, 0.0  ;;  %v1269_v46 = vmax.f32 %v1202_v42, 0.0  ;;  %v978_v47 = vpop.f32.mrb[31].mxu0  ;;  %v1204_v48 = vpop.f32.mrb[31].mxu1 }
 0x191   :  { %v1268_v51 = vmax.f32 %v978_v47, 0.0  ;;  %v1270_v52 = vmax.f32 %v1204_v48, 0.0 }
 0x192   :  { %v1299_v53 = vpack.c.bf16 %v1267_v45, %v1263_v43  ;;  %v1301_v54 = vpack.c.bf16 %v1269_v46, %v1265_v44 }
 0x193   :  { %v1300_v55 = vpack.c.bf16 %v1268_v51, %v1264_v49  ;;  %v1302_v56 = vpack.c.bf16 %v1270_v52, %v1266_v50 }
 0x195   :  { %1647 = vmatprep.mubr.bf16.mxu0 %v1300_v55  ;;  %1744 = vmatprep.mubr.bf16.mxu1 %v1302_v56 }
 0x196   :  { %1648 = vmatmul.mubr.bf16.gmra.mrb[60].mxu0 %v1299_v53  ;;  %1745 = vmatmul.mubr.bf16.gmra.mrb[60].mxu1 %v1301_v54 }
 0x231   :  { %v2038_v57 = vpop.f32.mrb[32].mxu0  ;;  %v2102_v58 = vpop.f32.mrb[32].mxu1 }
 0x232   :  { %v2039_v59 = vpop.f32.mrb[33].mxu0  ;;  %v2103_v60 = vpop.f32.mrb[33].mxu1 }
 0x233   :  { %v2040_v61 = vadd.f32 %v2039_v59, %v2038_v57  ;;  %v2104_v62 = vadd.f32 %v2103_v60, %v2102_v58  ;;  %v2041_v63 = vpop.f32.mrb[34].mxu0  ;;  %v2105_v0 = vpop.f32.mrb[34].mxu1 }
 0x234   :  { %v2042_v1 = vpop.f32.mrb[35].mxu0  ;;  %v2106_v2 = vpop.f32.mrb[35].mxu1 }
 0x235   :  { %v1691_v3 = vadd.f32 %v2104_v62, %v2040_v61  ;;  %v2043_v4 = vadd.f32 %v2042_v1, %v2041_v63  ;;  %v2107_v5 = vadd.f32 %v2106_v2, %v2105_v0  ;;  %v2950_v0 = vld [vmem:[%s2975_s3] ss:$0 sm:$0xff]  ;;  %s2449_s3 = smov [#allocation2]  }
 0x236   :  { %s1861_s29 = sshll.u32 %s2449_s3, 4  ;;  %s1862_s29 = int_to_ptr.vmem [resolvable:$true] %s1861_s29 }
 0x237   :  { %v1694_v6 = vadd.f32 %v2107_v5, %v2043_v4  ;;  %s2424_s30 = scalar_lea.vmem %s1862_s29, 128  ;;  %p2429_p1 = scmp.lt.s32.totalorder %s1862_s29, %s1862_s29 }
 0x238   :  { %p2425_p0 = scmp.ne.s32.totalorder %s1862_s29, %s2424_s30  ;;  %p2430_p2 = scmp.lt.s32.totalorder %s2424_s30, %s2424_s30 }
 0x239   :  { %v1753_v7 = vadd.f32 %v1694_v6, %v1691_v3  ;;  %v2044_v8 = vpop.f32.mrb[36].mxu0  ;;  %v2108_v9 = vpop.f32.mrb[36].mxu1 }
 0x23a   :  { %v2045_v10 = vpop.f32.mrb[37].mxu0  ;;  %v2109_v11 = vpop.f32.mrb[37].mxu1  ;;  %p2431_p3 = por %p2430_p2, %p2429_p1 }
 0x23b   :  { %v1754_v12 = vrot.slane %v1753_v7, 4  ;;  %v2046_v13 = vadd.f32 %v2045_v10, %v2044_v8  ;;  %v2110_v14 = vadd.f32 %v2109_v11, %v2108_v9  ;;  %v2047_v15 = vpop.f32.mrb[38].mxu0  ;;  %v2111_v16 = vpop.f32.mrb[38].mxu1 }
 0x23c   :  { %v2048_v17 = vpop.f32.mrb[39].mxu0  ;;  %v2112_v18 = vpop.f32.mrb[39].mxu1  ;;  %p2432_p4 = pnand %p2431_p3, %p2425_p0 }
 0x23d   :  { %v1755_v19 = vadd.f32 %v1754_v12, %v1753_v7  ;;  %v1699_v20 = vadd.f32 %v2110_v14, %v2046_v13  ;;  %v2049_v21 = vadd.f32 %v2048_v17, %v2047_v15  ;;  %v2113_v22 = vadd.f32 %v2112_v18, %v2111_v16 }
 0x23f   :  { %v1702_v23 = vadd.f32 %v2113_v22, %v2049_v21  ;;  %v1756_v24 = vrot.slane %v1755_v19, 2 }
 0x241   :  { %v1760_v25 = vadd.f32 %v1702_v23, %v1699_v20  ;;  %v2050_v26 = vpop.f32.mrb[40].mxu0  ;;  %v2114_v27 = vpop.f32.mrb[40].mxu1  ;;  %v1757_v35 = vadd.f32 %v1756_v24, %v1755_v19 }
 0x242   :  { %v2051_v28 = vpop.f32.mrb[41].mxu0  ;;  %v2115_v29 = vpop.f32.mrb[41].mxu1 }
 0x243   :  { %v1761_v30 = vrot.slane %v1760_v25, 4  ;;  %v2052_v31 = vadd.f32 %v2051_v28, %v2050_v26  ;;  %v2116_v32 = vadd.f32 %v2115_v29, %v2114_v27  ;;  %v2053_v33 = vpop.f32.mrb[42].mxu0  ;;  %v2117_v34 = vpop.f32.mrb[42].mxu1  ;;  %v1758_v43 = vrot.slane %v1757_v35, 1 }
 0x244   :  { %v2054_v36 = vpop.f32.mrb[43].mxu0  ;;  %v2118_v37 = vpop.f32.mrb[43].mxu1 }
 0x245   :  { %v1762_v38 = vadd.f32 %v1761_v30, %v1760_v25  ;;  %v1707_v39 = vadd.f32 %v2116_v32, %v2052_v31  ;;  %v2055_v40 = vadd.f32 %v2054_v36, %v2053_v33  ;;  %v2119_v41 = vadd.f32 %v2118_v37, %v2117_v34 }
 0x246   :  { %v1759_v56 = vadd.f32 %v1758_v43, %v1757_v35 }
 0x247   :  { %v1763_v42 = vrot.slane %v1762_v38, 2  ;;  %v1710_v44 = vadd.f32 %v2119_v41, %v2055_v40 }
 0x248   :  { %v1816_v5 = vadd.f32 %v2950_v0, %v1759_v56 }
 0x249   :  { %v1764_v45 = vadd.f32 %v1763_v42, %v1762_v38  ;;  %v2056_v46 = vpop.f32.mrb[44].mxu0  ;;  %v2120_v47 = vpop.f32.mrb[44].mxu1  ;;  %v1767_v48 = vadd.f32 %v1710_v44, %v1707_v39 }
 0x24a   :  { %v2057_v49 = vpop.f32.mrb[45].mxu0  ;;  %v2121_v50 = vpop.f32.mrb[45].mxu1 }
 0x24b   :  { %v1765_v51 = vrot.slane %v1764_v45, 1  ;;  %v2058_v52 = vadd.f32 %v2057_v49, %v2056_v46  ;;  %v2122_v53 = vadd.f32 %v2121_v50, %v2120_v47  ;;  %v2059_v54 = vpop.f32.mrb[46].mxu0  ;;  %v2123_v55 = vpop.f32.mrb[46].mxu1  ;;  %v1768_v57 = vrot.slane %v1767_v48, 4 }
 0x24c   :  { %v2060_v58 = vpop.f32.mrb[47].mxu0  ;;  %v2124_v59 = vpop.f32.mrb[47].mxu1 }
 0x24d   :  { %v1766_v60 = vadd.f32 %v1765_v51, %v1764_v45  ;;  %v1715_v61 = vadd.f32 %v2122_v53, %v2058_v52  ;;  %v2061_v62 = vadd.f32 %v2060_v58, %v2059_v54  ;;  %v2125_v63 = vadd.f32 %v2124_v59, %v2123_v55 }
 0x24e   :  { %v1769_v1 = vadd.f32 %v1768_v57, %v1767_v48 }
 0x24f   :  { %v1817_v2 = vadd.f32 %v2950_v0, %v1766_v60  ;;  %v1718_v3 = vadd.f32 %v2125_v63, %v2061_v62 }
 0x250   :  { %v1770_v4 = vrot.slane %v1769_v1, 2 }
 0x251   :  { %v1832_v6 = vrot.slane %v1817_v2, 7  ;;  %v1774_v7 = vadd.f32 %v1718_v3, %v1715_v61  ;;  %v2062_v8 = vpop.f32.mrb[48].mxu0  ;;  %v2126_v9 = vpop.f32.mrb[48].mxu1 }
 0x252   :  { %v1771_v10 = vadd.f32 %v1770_v4, %v1769_v1  ;;  %v2063_v11 = vpop.f32.mrb[49].mxu0  ;;  %v2127_v12 = vpop.f32.mrb[49].mxu1 }
 0x253   :  { %v1775_v13 = vrot.slane %v1774_v7, 4  ;;  %v2064_v14 = vadd.f32 %v2063_v11, %v2062_v8  ;;  %v2128_v15 = vadd.f32 %v2127_v12, %v2126_v9  ;;  %v2065_v16 = vpop.f32.mrb[50].mxu0  ;;  %v2129_v17 = vpop.f32.mrb[50].mxu1  ;;  %v1834_v18 = vsel %vm1833_vm0, %v1832_v6, %v1816_v5 }
 0x254   :  { %v1772_v19 = vrot.slane %v1771_v10, 1  ;;  %v2066_v20 = vpop.f32.mrb[51].mxu0  ;;  %v2130_v21 = vpop.f32.mrb[51].mxu1 }
 0x255   :  { %v1776_v22 = vadd.f32 %v1775_v13, %v1774_v7  ;;  %v1723_v23 = vadd.f32 %v2128_v15, %v2064_v14  ;;  %v2067_v24 = vadd.f32 %v2066_v20, %v2065_v16  ;;  %v2131_v25 = vadd.f32 %v2130_v21, %v2129_v17 }
 0x256   :  { %v1773_v26 = vadd.f32 %v1772_v19, %v1771_v10 }
 0x257   :  { %v1777_v27 = vrot.slane %v1776_v22, 2  ;;  %v1726_v28 = vadd.f32 %v2131_v25, %v2067_v24 }
 0x258   :  { %v1818_v29 = vadd.f32 %v2950_v0, %v1773_v26 }
 0x259   :  { %v1778_v30 = vadd.f32 %v1777_v27, %v1776_v22  ;;  %v1781_v31 = vadd.f32 %v1726_v28, %v1723_v23  ;;  %v2068_v32 = vpop.f32.mrb[52].mxu0  ;;  %v2132_v33 = vpop.f32.mrb[52].mxu1 }
 0x25a   :  { %v1835_v34 = vrot.slane %v1818_v29, 6  ;;  %v2069_v35 = vpop.f32.mrb[53].mxu0  ;;  %v2133_v36 = vpop.f32.mrb[53].mxu1 }
 0x25b   :  { %v1779_v37 = vrot.slane %v1778_v30, 1  ;;  %v1782_v38 = vrot.slane %v1781_v31, 4  ;;  %v2070_v39 = vadd.f32 %v2069_v35, %v2068_v32  ;;  %v2134_v40 = vadd.f32 %v2133_v36, %v2132_v33  ;;  %v2071_v41 = vpop.f32.mrb[54].mxu0  ;;  %v2135_v42 = vpop.f32.mrb[54].mxu1 }
 0x25c   :  { %v2072_v43 = vpop.f32.mrb[55].mxu0  ;;  %v2136_v44 = vpop.f32.mrb[55].mxu1  ;;  %v1837_v45 = vsel %vm1836_vm1, %v1835_v34, %v1834_v18 }
 0x25d   :  { %v1780_v46 = vadd.f32 %v1779_v37, %v1778_v30  ;;  %v1783_v47 = vadd.f32 %v1782_v38, %v1781_v31  ;;  %v1731_v48 = vadd.f32 %v2134_v40, %v2070_v39  ;;  %v2073_v49 = vadd.f32 %v2072_v43, %v2071_v41 }
 0x25e   :  { %v2137_v50 = vadd.f32 %v2136_v44, %v2135_v42 }
 0x25f   :  { %v1819_v51 = vadd.f32 %v2950_v0, %v1780_v46  ;;  %v1784_v52 = vrot.slane %v1783_v47, 2 }
 0x260   :  { %v1734_v53 = vadd.f32 %v2137_v50, %v2073_v49 }
 0x261   :  { %v1838_v54 = vrot.slane %v1819_v51, 5  ;;  %v1785_v55 = vadd.f32 %v1784_v52, %v1783_v47  ;;  %v2074_v56 = vpop.f32.mrb[56].mxu0  ;;  %v2138_v57 = vpop.f32.mrb[56].mxu1 }
 0x262   :  { %v1788_v58 = vadd.f32 %v1734_v53, %v1731_v48  ;;  %v2075_v59 = vpop.f32.mrb[57].mxu0  ;;  %v2139_v60 = vpop.f32.mrb[57].mxu1 }
 0x263   :  { %v1786_v61 = vrot.slane %v1785_v55, 1  ;;  %v2076_v62 = vadd.f32 %v2075_v59, %v2074_v56  ;;  %v2140_v63 = vadd.f32 %v2139_v60, %v2138_v57  ;;  %v2077_v1 = vpop.f32.mrb[58].mxu0  ;;  %v2141_v2 = vpop.f32.mrb[58].mxu1  ;;  %v1840_v3 = vsel %vm1839_vm2, %v1838_v54, %v1837_v45 }
 0x264   :  { %v1789_v4 = vrot.slane %v1788_v58, 4  ;;  %v2078_v5 = vpop.f32.mrb[59].mxu0  ;;  %v2142_v6 = vpop.f32.mrb[59].mxu1 }
 0x265   :  { %v1787_v7 = vadd.f32 %v1786_v61, %v1785_v55  ;;  %v1739_v8 = vadd.f32 %v2140_v63, %v2076_v62  ;;  %v2079_v9 = vadd.f32 %v2078_v5, %v2077_v1  ;;  %v2143_v10 = vadd.f32 %v2142_v6, %v2141_v2 }
 0x266   :  { %v1790_v11 = vadd.f32 %v1789_v4, %v1788_v58 }
 0x267   :  { %v1820_v12 = vadd.f32 %v2950_v0, %v1787_v7  ;;  %v1742_v13 = vadd.f32 %v2143_v10, %v2079_v9 }
 0x268   :  { %v1791_v14 = vrot.slane %v1790_v11, 2 }
 0x269   :  { %v1841_v15 = vrot.slane %v1820_v12, 4  ;;  %v1795_v16 = vadd.f32 %v1742_v13, %v1739_v8  ;;  %v2080_v17 = vpop.f32.mrb[60].mxu0  ;;  %v2144_v18 = vpop.f32.mrb[60].mxu1 }
 0x26a   :  { %v1792_v19 = vadd.f32 %v1791_v14, %v1790_v11  ;;  %v2081_v20 = vpop.f32.mrb[61].mxu0  ;;  %v2145_v21 = vpop.f32.mrb[61].mxu1 }
 0x26b   :  { %v1796_v22 = vrot.slane %v1795_v16, 4  ;;  %v2082_v23 = vadd.f32 %v2081_v20, %v2080_v17  ;;  %v2146_v24 = vadd.f32 %v2145_v21, %v2144_v18  ;;  %v2083_v25 = vpop.f32.mrb[62].mxu0  ;;  %v2147_v26 = vpop.f32.mrb[62].mxu1  ;;  %v1843_v27 = vsel %vm1842_vm3, %v1841_v15, %v1840_v3 }
 0x26c   :  { %v1793_v28 = vrot.slane %v1792_v19, 1  ;;  %v2084_v29 = vpop.f32.mrb[63].mxu0  ;;  %v2148_v30 = vpop.f32.mrb[63].mxu1 }
 0x26d   :  { %v1797_v31 = vadd.f32 %v1796_v22, %v1795_v16  ;;  %v1747_v32 = vadd.f32 %v2146_v24, %v2082_v23  ;;  %v2085_v33 = vadd.f32 %v2084_v29, %v2083_v25  ;;  %v2149_v34 = vadd.f32 %v2148_v30, %v2147_v26 }
 0x26e   :  { %v1794_v35 = vadd.f32 %v1793_v28, %v1792_v19 }
 0x26f   :  { %v1798_v36 = vrot.slane %v1797_v31, 2  ;;  %v1750_v37 = vadd.f32 %v2149_v34, %v2085_v33 }
 0x270   :  { %v1821_v38 = vadd.f32 %v2950_v0, %v1794_v35 }
 0x271   :  { %v1799_v39 = vadd.f32 %v1798_v36, %v1797_v31  ;;  %v1802_v40 = vadd.f32 %v1750_v37, %v1747_v32 }
 0x272   :  { %v1844_v41 = vrot.slane %v1821_v38, 3 }
 0x273   :  { %v1800_v42 = vrot.slane %v1799_v39, 1  ;;  %v1803_v43 = vrot.slane %v1802_v40, 4 }
 0x274   :  { %v1846_v44 = vsel %vm1845_vm4, %v1844_v41, %v1843_v27 }
 0x275   :  { %v1801_v45 = vadd.f32 %v1800_v42, %v1799_v39  ;;  %v1804_v46 = vadd.f32 %v1803_v43, %v1802_v40 }
 0x277   :  { %v1805_v47 = vrot.slane %v1804_v46, 2  ;;  %v1822_v48 = vadd.f32 %v2950_v0, %v1801_v45 }
 0x279   :  { %v1806_v49 = vadd.f32 %v1805_v47, %v1804_v46  ;;  %v1847_v50 = vrot.slane %v1822_v48, 2 }
 0x27b   :  { %v1807_v51 = vrot.slane %v1806_v49, 1  ;;  %v1849_v52 = vsel %vm1848_vm5, %v1847_v50, %v1846_v44 }
 0x27d   :  { %v1808_v53 = vadd.f32 %v1807_v51, %v1806_v49 }
 0x27f   :  { %v1823_v54 = vadd.f32 %v2950_v0, %v1808_v53 }
 0x281   :  { %v1850_v55 = vrot.slane %v1823_v54, 1 }
 0x283   :  { %v1852_v56 = vsel %vm1851_vm6, %v1850_v55, %v1849_v52 }
 0x284   :  { %1854 = vst [vmem:[#allocation2] sm:$0xff] %v1852_v56 }
 0x285   :  { %2435 = shalt.err (!%p2432_p4)
}
 0x286   :  { %s2436_s7 = scalar_lea.hbm %s2976_s4, 128 }
 0x287   :  { %p2437_p5 = scmp.ne.s32.totalorder %s2976_s4, %s2436_s7  ;;  %p2440_p6 = scmp.lt.u32.totalorder %s2436_s7, %s2976_s4 }
 0x289   :  { %p2442_p7 = pnand %p2440_p6, %p2437_p5 }
 0x28b   :  { %2445 = shalt.err (!%p2442_p7)
}
 0x28c   :  { %1864 = dma.vmem_to_hbm [thread:$0]  %s1862_s29, 128, %s2976_s4, [#allocation3]  }
 0x28d   :  { %2446 = dma.done.wait [#allocation3], 128  }
 0x28e   :  { %2447 = vsyncadd [#allocation3], 4294967168 }
 0x28f   :  { %1868 = vsyncpa [#allocation3], 1 }

</bundles_post_ra>
